<compile_context>
chip_gen: v5e
topology: v5e:2x2
jax: 0.10.0
libtpu: 0.0.40
codegen_flags: <defaults>
</compile_context>

<pallas_src>
import math

import jax
import jax.numpy as jnp
from jax import lax
from jax.experimental import pallas as pl
from jax.experimental.pallas import tpu as pltpu


def _make_attention_kernel(*, tq, seq, seq_pad, dim, mask_mode, need_weights,
                           self_attn, persist_kv, use_bf16):
    """Builds the per-(batch, query-tile) kernel body."""
    compute_dtype = jnp.bfloat16 if use_bf16 else jnp.float32
    padded = seq_pad != seq

    def kernel(*refs):
        i = 0
        if self_attn:
            x_ref = refs[i]; i += 1          # (1, S_pad, D) full (padded) sequence
            wq_ref = refs[i]; i += 1         # (D, D)   WQ with 1/sqrt(D) folded in
            wkv_ref = refs[i]; i += 1        # (D, 2D)  fused [WK | WV]
        else:
            q_ref = refs[i]; i += 1          # (1, tq, D) query tile
            k_ref = refs[i]; i += 1          # (1, S_pad, D)
            v_ref = refs[i]; i += 1          # (1, S_pad, D)
            wq_ref = refs[i]; i += 1         # (D, D) scaled WQ
            wk_ref = refs[i]; i += 1         # (D, D)
            wv_ref = refs[i]; i += 1         # (D, D)
        mask_ref = None
        if mask_mode == "tensor":
            mask_ref = refs[i]; i += 1       # (1, tq, S_pad) int8, nonzero == masked
        out_ref = refs[i]; i += 1            # (1, tq, D)
        attnw_ref = None
        if need_weights:
            attnw_ref = refs[i]; i += 1      # (1, tq, S_pad)
        kv_scratch = refs[i] if persist_kv else None   # (2, S_pad, D) compute_dtype

        qi = pl.program_id(1)

        def project_kv():
            # MXU operands in compute_dtype (bf16 on the fast path), f32 accumulate.
            if self_attn:
                x = x_ref[0].astype(compute_dtype)
                # One fused (S_pad, 2D) matmul instead of two (S_pad, D) ones:
                # fills the 256-wide MXU better and halves push/pop overhead.
                kv = jnp.dot(x, wkv_ref[...], preferred_element_type=jnp.float32)
                return (kv[:, :dim].astype(compute_dtype),
                        kv[:, dim:].astype(compute_dtype))
            k = jnp.dot(k_ref[0].astype(compute_dtype), wk_ref[...],
                        preferred_element_type=jnp.float32).astype(compute_dtype)
            v = jnp.dot(v_ref[0].astype(compute_dtype), wv_ref[...],
                        preferred_element_type=jnp.float32).astype(compute_dtype)
            return k, v

        if persist_kv:
            # K/V projections once per batch (qi == 0); every query tile of the
            # batch reuses the bf16 scratch (halved VMEM + feed bandwidth).
            @pl.when(qi == 0)
            def _():
                k0, v0 = project_kv()
                kv_scratch[0] = k0
                kv_scratch[1] = v0
            k = kv_scratch[0]
            v = kv_scratch[1]
        else:
            # Either a single query tile (nothing to reuse) or the B == 1
            # schedule where the query-tile axis is "parallel" (both v7x cores
            # busy) and the cheap K/V recompute is paid per tile.
            k, v = project_kv()

        # --- Q projection for this tile; 1/sqrt(D) already folded into wq. ---
        if self_attn:
            q_start = pl.multiple_of(qi * tq, tq)
            q_in = x_ref[0, pl.ds(q_start, tq), :]
        else:
            q_in = q_ref[0]
        q = jnp.dot(q_in.astype(compute_dtype), wq_ref[...],
                    preferred_element_type=jnp.float32).astype(compute_dtype)

        # QK^T without materializing K.T (contract dim 1 of both operands).
        logits = lax.dot_general(q, k, (((1,), (1,)), ((), ())),
                                 preferred_element_type=jnp.float32)  # (tq, S_pad) f32

        # --- mask (True == masked); all pieces OR-ed, one pre-softmax select ---
        m = None
        if mask_mode == "tensor":
            m = mask_ref[0] != 0
        if mask_mode == "causal" or padded:
            cols = lax.broadcasted_iota(jnp.int32, (tq, seq_pad), 1)
            gen = None
            if mask_mode == "causal":
                rows = qi * tq + lax.broadcasted_iota(jnp.int32, (tq, seq_pad), 0)
                gen = cols > rows
            if padded:
                pad_m = cols >= seq           # padded keys are always masked
                gen = pad_m if gen is None else (gen | pad_m)
            m = gen if m is None else (m | gen)
        if m is not None:
            logits = jnp.where(m, -jnp.inf, logits)

        # Softmax along the key axis, always in f32.
        row_max = jnp.max(logits, axis=-1, keepdims=True)
        p = jnp.exp(logits - row_max)
        denom = jnp.sum(p, axis=-1, keepdims=True)
        # approx recip runs on the EUP slot (~free); exact recip only on the
        # f32-parity path where 1e-5 agreement with torch is asserted.
        attn_w = p * pl.reciprocal(denom, approx=use_bf16)
        if mask_mode == "tensor":
            # torch parity: masked_fill(0.0) after softmax.  Only needed for
            # user-supplied masks (fully-masked rows -> 0, not NaN); generated
            # causal/padding masks already yield exact zeros via exp(-inf).
            attn_w = jnp.where(m, 0.0, attn_w)

        # TODO(synk): dropout_p > 0 would need pltpu.prng_seed/prng_random_bits;
        # identity here (p == 0 / eval), matching the module's hot path.

        out_ref[0] = jnp.dot(attn_w.astype(compute_dtype), v,
                             preferred_element_type=jnp.float32
                             ).astype(out_ref.dtype)
        if need_weights:
            attnw_ref[0] = attn_w.astype(attnw_ref.dtype)

    return kernel


def prepare_params(WQ, WK, WV, *, precision="bf16"):
    """One-time parameter prep (call at init, NOT per forward).

    Folds 1/sqrt(D) into WQ, fuses WK|WV into a single (D, 2D) operand for the
    self-attention K/V projection, and stores everything in the MXU operand
    dtype (bf16 by default) so no concat / cast / scale HBM traffic is paid on
    the per-call hot path.
    """
    assert precision in ("bf16", "f32")
    D = WQ.shape[0]
    w_dtype = jnp.bfloat16 if precision == "bf16" else jnp.float32
    scale = 1.0 / math.sqrt(D)
    wq = (WQ * scale).astype(w_dtype)
    wk = WK.astype(w_dtype)
    wv = WV.astype(w_dtype)
    return dict(dim=D, precision=precision, wq=wq, wk=wk, wv=wv,
                wkv=jnp.concatenate([wk, wv], axis=1))


def _nbytes(shape, dtype):
    n = 1
    for d in shape:
        n *= d
    return n * jnp.dtype(dtype).itemsize


def attention_forward(params, query, key, value, mask=None, *,
                      is_causal=False, need_weights=True, block_q=128,
                      weights_dtype=jnp.float32):
    """Pallas equivalent of Attention.forward.

    params:           output of prepare_params (init-time fused/scaled weights)
    query/key/value:  (B, S, D) float32
    mask:             optional (B, S, S) pre-merged mask, nonzero/True == masked
                      (pass int8 to avoid the per-call cast fallback)
    is_causal:        generate the causal mask in-kernel (mask arg ignored)
    need_weights:     also return the (B, S, S) attention weights
    weights_dtype:    dtype of the attention-weights output (bf16 halves the
                      (B,S,S) HBM writeback when tolerance allows)

    Returns (output (B,S,D) f32, attn_weights (B,S,S) or None).
    """
    B, S, D = query.shape
    assert D == params["dim"]
    precision = params["precision"]
    compute_dtype = jnp.bfloat16 if precision == "bf16" else jnp.float32
    self_attn = (query is key) and (key is value)

    # --- query tile / padded sequence length (avoid the tq = S blow-up) ---
    if S <= block_q:
        tq, S_pad = S, S
    else:
        tq = max(8, (block_q // 8) * 8)          # sublane-aligned tile
        S_pad = ((S + tq - 1) // tq) * tq        # pad S up to a tile multiple
    nq = S_pad // tq
    pad = S_pad - S

    def pad_seq(x):
        return x if pad == 0 else jnp.pad(x, ((0, 0), (0, pad), (0, 0)))

    qp = pad_seq(query)
    if self_attn:
        kp = vp = qp
    else:
        kp = pad_seq(key)
        vp = pad_seq(value)

    mask_mode = "causal" if is_causal else ("tensor" if mask is not None else "none")
    mask_i8 = None
    if mask_mode == "tensor":
        # Callers should pre-build an int8 mask once; this cast is only a
        # compatibility fallback for bool masks.
        mask_i8 = mask if mask.dtype == jnp.int8 else mask.astype(jnp.int8)
        if pad:
            mask_i8 = jnp.pad(mask_i8, ((0, 0), (0, pad), (0, pad)))

    # K/V reuse strategy:
    #   nq == 1            -> nothing to reuse, compute inline (no scratch).
    #   B >= 2 or D > tq   -> persistent per-batch scratch; batch axis parallel.
    #   B == 1 and D <= tq -> recompute per tile (extra 4*S*D^2 flops << tile
    #                         work) so the tile axis can be "parallel" and both
    #                         v7x TensorCores stay busy.
    if nq == 1:
        persist_kv, qsem = False, "arbitrary"
    elif B >= 2 or D > tq:
        persist_kv, qsem = True, "arbitrary"
    else:
        persist_kv, qsem = False, "parallel"

    kernel = _make_attention_kernel(
        tq=tq, seq=S, seq_pad=S_pad, dim=D, mask_mode=mask_mode,
        need_weights=need_weights, self_attn=self_attn,
        persist_kv=persist_kv, use_bf16=(precision == "bf16"))

    in_specs, inputs = [], []
    vmem_need = 0

    def _add_input(arr, block_shape, index_map):
        nonlocal vmem_need
        in_specs.append(pl.BlockSpec(block_shape, index_map))
        inputs.append(arr)
        vmem_need += 2 * _nbytes(block_shape, arr.dtype)   # double-buffered

    if self_attn:
        _add_input(qp, (1, S_pad, D), lambda b, qi: (b, 0, 0))
        _add_input(params["wq"], (D, D), lambda b, qi: (0, 0))
        _add_input(params["wkv"], (D, 2 * D), lambda b, qi: (0, 0))
    else:
        _add_input(qp, (1, tq, D), lambda b, qi: (b, qi, 0))
        _add_input(kp, (1, S_pad, D), lambda b, qi: (b, 0, 0))
        _add_input(vp, (1, S_pad, D), lambda b, qi: (b, 0, 0))
        _add_input(params["wq"], (D, D), lambda b, qi: (0, 0))
        _add_input(params["wk"], (D, D), lambda b, qi: (0, 0))
        _add_input(params["wv"], (D, D), lambda b, qi: (0, 0))
    if mask_mode == "tensor":
        _add_input(mask_i8, (1, tq, S_pad), lambda b, qi: (b, qi, 0))

    out_spec = pl.BlockSpec((1, tq, D), lambda b, qi: (b, qi, 0))
    out_struct = jax.ShapeDtypeStruct((B, S_pad, D), jnp.float32)
    vmem_need += 2 * _nbytes((1, tq, D), jnp.float32)
    if need_weights:
        out_specs = (out_spec,
                     pl.BlockSpec((1, tq, S_pad), lambda b, qi: (b, qi, 0)))
        out_shape = (out_struct,
                     jax.ShapeDtypeStruct((B, S_pad, S_pad), weights_dtype))
        vmem_need += 2 * _nbytes((1, tq, S_pad), weights_dtype)
    else:
        out_specs, out_shape = out_spec, out_struct

    scratch_shapes = []
    if persist_kv:
        scratch_shapes.append(pltpu.VMEM((2, S_pad, D), compute_dtype))
        vmem_need += _nbytes((2, S_pad, D), compute_dtype)

    # Generation-aware VMEM budget: actual block bytes + headroom, clamped to
    # the chip's capacity (v7x: 64 MiB/TC, v5e/v6e: 128 MiB physical).
    try:
        vmem_cap = int(pltpu.get_tpu_info().vmem_capacity_bytes)
    except Exception:
        vmem_cap = 64 * 1024 * 1024
    vmem_limit = int(min(max(vmem_need * 3 // 2 + (4 << 20), 16 << 20), vmem_cap))
    # TODO(synk): if vmem_need approaches vmem_cap (very large S / D), shrink
    # block_q, add a kv grid axis with online softmax, and/or Buffered(1) the
    # per-batch (1, S_pad, D) inputs.

    grid_spec = pltpu.PrefetchScalarGridSpec(
        num_scalar_prefetch=0,
        grid=(B, nq),
        in_specs=in_specs,
        out_specs=out_specs,
        scratch_shapes=scratch_shapes,
    )

    result = pl.pallas_call(
        kernel,
        out_shape=out_shape,
        grid_spec=grid_spec,
        compiler_params=pltpu.CompilerParams(
            dimension_semantics=("parallel", qsem),
            vmem_limit_bytes=vmem_limit,
        ),
    )(*inputs)

    if need_weights:
        out, attn_w = result
    else:
        out, attn_w = result, None
    if pad:
        out = out[:, :S, :]
        if attn_w is not None:
            attn_w = attn_w[:, :S, :S]
    return out, attn_w


def xavier_uniform(key, fan_in, fan_out, dtype=jnp.float32):
    bound = math.sqrt(6.0 / (fan_in + fan_out))
    return jax.random.uniform(key, (fan_in, fan_out), dtype=dtype,
                              minval=-bound, maxval=bound)


def reference_forward(query, key, value, WQ, WK, WV, mask=None):
    Q = query @ WQ
    K = key @ WK
    V = value @ WV
    logits = jnp.einsum("bqd,bkd->bqk", Q, K) / math.sqrt(Q.shape[-1])
    if mask is not None:
        logits = jnp.where(mask, -jnp.inf, logits)
    w = jax.nn.softmax(logits, axis=-1)
    if mask is not None:
        w = jnp.where(mask, 0.0, w)
    return jnp.einsum("bqk,bkd->bqd", w, V), w


def causal_mask(B, S):
    return jnp.broadcast_to(jnp.triu(jnp.ones((S, S), dtype=bool), k=1)[None],
                            (B, S, S))


if __name__ == "__main__":
    B, S, D = 2, 8, 32
    root = jax.random.PRNGKey(0)
    kq, kk, kv, kwq, kwk, kwv, kx2, kx3 = jax.random.split(root, 8)

    query = jax.random.normal(kq, (B, S, D), dtype=jnp.float32)
    key = jax.random.normal(kk, (B, S, D), dtype=jnp.float32)
    value = jax.random.normal(kv, (B, S, D), dtype=jnp.float32)

    WQ = xavier_uniform(kwq, D, D)
    WK = xavier_uniform(kwk, D, D)
    WV = xavier_uniform(kwv, D, D)

    # Init-time parameter prep (fused + scaled weights), done ONCE.
    params_f32 = prepare_params(WQ, WK, WV, precision="f32")
    params_bf16 = prepare_params(WQ, WK, WV, precision="bf16")

    cmask_bool = causal_mask(B, S)
    cmask_i8 = cmask_bool.astype(jnp.int8)   # built once at setup, not per call

    TOL_F32 = dict(atol=1e-5, rtol=1e-5)
    # bf16 MXU operands (f32 accumulate): loosened tolerance vs the f32 reference.
    TOL_BF16 = dict(atol=1e-1, rtol=5e-2)

    # 1) Exact torch parity: f32 operands, general q/k/v, explicit int8 mask.
    out, attn_w = attention_forward(params_f32, query, key, value, mask=cmask_i8)
    jax.block_until_ready((out, attn_w))
    out_ref, attn_ref = reference_forward(query, key, value, WQ, WK, WV, cmask_bool)
    assert jnp.allclose(out, out_ref, **TOL_F32)
    assert jnp.allclose(attn_w, attn_ref, **TOL_F32)

    # 2) bf16 MXU path, causal mask generated in-kernel (no mask HBM traffic).
    out_c, attn_c = attention_forward(params_bf16, query, key, value, is_causal=True)
    jax.block_until_ready((out_c, attn_c))
    assert jnp.allclose(out_c, out_ref, **TOL_BF16)
    assert jnp.allclose(attn_c, attn_ref, **TOL_BF16)

    # 3) Self-attention fast path (fused W_kv, single input stream), no weights.
    out_s, w_none = attention_forward(params_bf16, query, query, query,
                                      is_causal=True, need_weights=False)
    jax.block_until_ready(out_s)
    out_s_ref, _ = reference_forward(query, query, query, WQ, WK, WV, cmask_bool)
    assert w_none is None
    assert jnp.allclose(out_s, out_s_ref, **TOL_BF16)

    # 4) Tiled query axis with persistent bf16 K/V scratch (S=16, tq=8), unmasked.
    S2 = 16
    q2 = jax.random.normal(kx2, (B, S2, D), dtype=jnp.float32)
    out_t, attn_t = attention_forward(params_bf16, q2, q2, q2, block_q=8)
    jax.block_until_ready((out_t, attn_t))
    out_t_ref, attn_t_ref = reference_forward(q2, q2, q2, WQ, WK, WV, None)
    assert jnp.allclose(out_t, out_t_ref, **TOL_BF16)
    assert jnp.allclose(attn_t, attn_t_ref, **TOL_BF16)

    # 5) Non-divisible sequence: padded to a tile multiple, tail masked in-kernel.
    S3 = 20                                   # -> padded to 24 with block_q=8
    q3 = jax.random.normal(kx3, (B, S3, D), dtype=jnp.float32)
    out_p, attn_p = attention_forward(params_bf16, q3, q3, q3,
                                      is_causal=True, block_q=8)
    jax.block_until_ready((out_p, attn_p))
    out_p_ref, attn_p_ref = reference_forward(q3, q3, q3, WQ, WK, WV,
                                              causal_mask(B, S3))
    assert out_p.shape == (B, S3, D) and attn_p.shape == (B, S3, S3)
    assert jnp.allclose(out_p, out_p_ref, **TOL_BF16)
    assert jnp.allclose(attn_p, attn_p_ref, **TOL_BF16)

    # 6) B=1: K/V recomputed per query tile so the tile axis is "parallel"
    #    (keeps both v7x TensorCores busy instead of idling one).
    S4, BQ4 = 64, 32
    q4 = jax.random.normal(jax.random.PRNGKey(7), (1, S4, D), dtype=jnp.float32)
    out_m, attn_m = attention_forward(params_bf16, q4, q4, q4,
                                      is_causal=True, block_q=BQ4)
    jax.block_until_ready((out_m, attn_m))
    out_m_ref, attn_m_ref = reference_forward(q4, q4, q4, WQ, WK, WV,
                                              causal_mask(1, S4))
    assert jnp.allclose(out_m, out_m_ref, **TOL_BF16)
    assert jnp.allclose(attn_m, attn_m_ref, **TOL_BF16)

    print("KERNEL_OK")
</pallas_src>

<mosaic_0001>
module attributes {stable_mosaic.version = 11 : i64} {
  func.func @kernel(%arg0: i32, %arg1: i32, %arg2: memref<1x8x32xf32, #tpu.memory_space<vmem>>, %arg3: memref<1x8x32xf32, #tpu.memory_space<vmem>>, %arg4: memref<1x8x32xf32, #tpu.memory_space<vmem>>, %arg5: memref<32x32xf32, #tpu.memory_space<vmem>>, %arg6: memref<32x32xf32, #tpu.memory_space<vmem>>, %arg7: memref<32x32xf32, #tpu.memory_space<vmem>>, %arg8: memref<1x8x8xi8, #tpu.memory_space<vmem>>, %arg9: memref<1x8x32xf32, #tpu.memory_space<vmem>>, %arg10: memref<1x8x8xf32, #tpu.memory_space<vmem>>) attributes {dimension_semantics = [#tpu.dimension_semantics<parallel>, #tpu.dimension_semantics<arbitrary>], iteration_bounds = array<i64: 2, 1>, scalar_prefetch = 0 : i64, scratch_operands = 0 : i64, tpu.core_type = #tpu.core_type<tc>, window_params = [{transform_indices = @transform_0, window_bounds = array<i64: 1, 8, 32>}, {transform_indices = @transform_1, window_bounds = array<i64: 1, 8, 32>}, {transform_indices = @transform_2, window_bounds = array<i64: 1, 8, 32>}, {pipeline_mode = #tpu.pipeline_mode<synchronous>, transform_indices = @transform_3, window_bounds = array<i64: 32, 32>}, {pipeline_mode = #tpu.pipeline_mode<synchronous>, transform_indices = @transform_4, window_bounds = array<i64: 32, 32>}, {pipeline_mode = #tpu.pipeline_mode<synchronous>, transform_indices = @transform_5, window_bounds = array<i64: 32, 32>}, {transform_indices = @transform_6, window_bounds = array<i64: 1, 8, 8>}, {transform_indices = @transform_7, window_bounds = array<i64: 1, 8, 32>}, {transform_indices = @transform_8, window_bounds = array<i64: 1, 8, 8>}]} {
    %c0 = arith.constant 0 : index
    %c0_0 = arith.constant 0 : index
    %c0_1 = arith.constant 0 : index
    %0 = vector.load %arg3[%c0, %c0_0, %c0_1] : memref<1x8x32xf32, #tpu.memory_space<vmem>>, vector<1x8x32xf32>
    %1 = vector.shape_cast %0 : vector<1x8x32xf32> to vector<8x32xf32>
    %c0_2 = arith.constant 0 : index
    %c0_3 = arith.constant 0 : index
    %2 = vector.load %arg6[%c0_2, %c0_3] : memref<32x32xf32, #tpu.memory_space<vmem>>, vector<32x32xf32>
    %cst = arith.constant dense<0.000000e+00> : vector<8x32xf32>
    %3 = tpu.matmul %1, %2, %cst {dimension_numbers = #tpu.dot_dimension_numbers<[1], [0], [0], [1], [0, 0, 1, 1], [], []>} : vector<8x32xf32>, vector<32x32xf32>, vector<8x32xf32> -> vector<8x32xf32>
    %c0_4 = arith.constant 0 : index
    %c0_5 = arith.constant 0 : index
    %c0_6 = arith.constant 0 : index
    %4 = vector.load %arg4[%c0_4, %c0_5, %c0_6] : memref<1x8x32xf32, #tpu.memory_space<vmem>>, vector<1x8x32xf32>
    %5 = vector.shape_cast %4 : vector<1x8x32xf32> to vector<8x32xf32>
    %c0_7 = arith.constant 0 : index
    %c0_8 = arith.constant 0 : index
    %6 = vector.load %arg7[%c0_7, %c0_8] : memref<32x32xf32, #tpu.memory_space<vmem>>, vector<32x32xf32>
    %cst_9 = arith.constant dense<0.000000e+00> : vector<8x32xf32>
    %7 = tpu.matmul %5, %6, %cst_9 {dimension_numbers = #tpu.dot_dimension_numbers<[1], [0], [0], [1], [0, 0, 1, 1], [], []>} : vector<8x32xf32>, vector<32x32xf32>, vector<8x32xf32> -> vector<8x32xf32>
    %c0_10 = arith.constant 0 : index
    %c0_11 = arith.constant 0 : index
    %c0_12 = arith.constant 0 : index
    %8 = vector.load %arg2[%c0_10, %c0_11, %c0_12] : memref<1x8x32xf32, #tpu.memory_space<vmem>>, vector<1x8x32xf32>
    %9 = vector.shape_cast %8 : vector<1x8x32xf32> to vector<8x32xf32>
    %c0_13 = arith.constant 0 : index
    %c0_14 = arith.constant 0 : index
    %10 = vector.load %arg5[%c0_13, %c0_14] : memref<32x32xf32, #tpu.memory_space<vmem>>, vector<32x32xf32>
    %cst_15 = arith.constant dense<0.000000e+00> : vector<8x32xf32>
    %11 = tpu.matmul %9, %10, %cst_15 {dimension_numbers = #tpu.dot_dimension_numbers<[1], [0], [0], [1], [0, 0, 1, 1], [], []>} : vector<8x32xf32>, vector<32x32xf32>, vector<8x32xf32> -> vector<8x32xf32>
    %cst_16 = arith.constant dense<0.000000e+00> : vector<8x8xf32>
    %12 = tpu.matmul %11, %3, %cst_16 {dimension_numbers = #tpu.dot_dimension_numbers<[1], [1], [0], [0], [0, 0, 1, 0], [], []>} : vector<8x32xf32>, vector<8x32xf32>, vector<8x8xf32> -> vector<8x8xf32>
    %c0_17 = arith.constant 0 : index
    %c0_18 = arith.constant 0 : index
    %c0_19 = arith.constant 0 : index
    %13 = vector.load %arg8[%c0_17, %c0_18, %c0_19] : memref<1x8x8xi8, #tpu.memory_space<vmem>>, vector<1x8x8xi8>
    %14 = vector.shape_cast %13 : vector<1x8x8xi8> to vector<8x8xi8>
    %c0_i8 = arith.constant 0 : i8
    %15 = vector.broadcast %c0_i8 : i8 to vector<8x8xi8>
    %16 = arith.cmpi ne, %14, %15 : vector<8x8xi8>
    %cst_20 = arith.constant 0xFF800000 : f32
    %17 = vector.broadcast %cst_20 : f32 to vector<8x8xf32>
    %18 = arith.select %16, %17, %12 : vector<8x8xi1>, vector<8x8xf32>
    %cst_21 = arith.constant dense<0xFF800000> : vector<8xf32>
    %19 = vector.multi_reduction <maximumf>, %18, %cst_21 [1] : vector<8x8xf32> to vector<8xf32>
    %20 = vector.shape_cast %19 : vector<8xf32> to vector<8x1xf32>
    %21 = vector.broadcast %20 : vector<8x1xf32> to vector<8x8xf32>
    %22 = arith.subf %18, %21 : vector<8x8xf32>
    %23 = math.exp %22 : vector<8x8xf32>
    %cst_22 = arith.constant dense<0.000000e+00> : vector<8xf32>
    %24 = vector.multi_reduction <add>, %23, %cst_22 [1] : vector<8x8xf32> to vector<8xf32>
    %25 = vector.shape_cast %24 : vector<8xf32> to vector<8x1xf32>
    %26 = tpu.reciprocal %25 : vector<8x1xf32> -> vector<8x1xf32>
    %27 = vector.broadcast %26 : vector<8x1xf32> to vector<8x8xf32>
    %28 = arith.mulf %23, %27 : vector<8x8xf32>
    %cst_23 = arith.constant 0.000000e+00 : f32
    %29 = vector.broadcast %cst_23 : f32 to vector<8x8xf32>
    %30 = arith.select %16, %29, %28 : vector<8x8xi1>, vector<8x8xf32>
    %cst_24 = arith.constant dense<0.000000e+00> : vector<8x32xf32>
    %31 = tpu.matmul %30, %7, %cst_24 {dimension_numbers = #tpu.dot_dimension_numbers<[1], [0], [0], [1], [0, 0, 1, 1], [], []>} : vector<8x8xf32>, vector<8x32xf32>, vector<8x32xf32> -> vector<8x32xf32>
    %c0_25 = arith.constant 0 : index
    %c0_26 = arith.constant 0 : index
    %c0_27 = arith.constant 0 : index
    %32 = vector.load %arg9[%c0_25, %c0_26, %c0_27] : memref<1x8x32xf32, #tpu.memory_space<vmem>>, vector<1x8x32xf32>
    %33 = vector.shape_cast %32 : vector<1x8x32xf32> to vector<8x32xf32>
    %34 = vector.shape_cast %31 : vector<8x32xf32> to vector<1x8x32xf32>
    tpu.vector_store %arg9[%c0_25, %c0_26, %c0_27], %34 {strides = array<i32>} : memref<1x8x32xf32, #tpu.memory_space<vmem>>, vector<1x8x32xf32>,
    %c0_28 = arith.constant 0 : index
    %c0_29 = arith.constant 0 : index
    %c0_30 = arith.constant 0 : index
    %35 = vector.load %arg10[%c0_28, %c0_29, %c0_30] : memref<1x8x8xf32, #tpu.memory_space<vmem>>, vector<1x8x8xf32>
    %36 = vector.shape_cast %35 : vector<1x8x8xf32> to vector<8x8xf32>
    %37 = vector.shape_cast %30 : vector<8x8xf32> to vector<1x8x8xf32>
    tpu.vector_store %arg10[%c0_28, %c0_29, %c0_30], %37 {strides = array<i32>} : memref<1x8x8xf32, #tpu.memory_space<vmem>>, vector<1x8x8xf32>,
    return
  }
  func.func @transform_0(%arg0: i32, %arg1: i32) -> (i32, i32, i32) {
    %c0_i32 = arith.constant 0 : i32
    %c0_i32_0 = arith.constant 0 : i32
    return %arg0, %arg1, %c0_i32 : i32, i32, i32
  }
  func.func @transform_1(%arg0: i32, %arg1: i32) -> (i32, i32, i32) {
    %c0_i32 = arith.constant 0 : i32
    %c0_i32_0 = arith.constant 0 : i32
    %c0_i32_1 = arith.constant 0 : i32
    return %arg0, %c0_i32, %c0_i32_0 : i32, i32, i32
  }
  func.func @transform_2(%arg0: i32, %arg1: i32) -> (i32, i32, i32) {
    %c0_i32 = arith.constant 0 : i32
    %c0_i32_0 = arith.constant 0 : i32
    %c0_i32_1 = arith.constant 0 : i32
    return %arg0, %c0_i32, %c0_i32_0 : i32, i32, i32
  }
  func.func @transform_3(%arg0: i32, %arg1: i32) -> (i32, i32) {
    %c0_i32 = arith.constant 0 : i32
    %c0_i32_0 = arith.constant 0 : i32
    %c0_i32_1 = arith.constant 0 : i32
    return %c0_i32, %c0_i32_0 : i32, i32
  }
  func.func @transform_4(%arg0: i32, %arg1: i32) -> (i32, i32) {
    %c0_i32 = arith.constant 0 : i32
    %c0_i32_0 = arith.constant 0 : i32
    %c0_i32_1 = arith.constant 0 : i32
    return %c0_i32, %c0_i32_0 : i32, i32
  }
  func.func @transform_5(%arg0: i32, %arg1: i32) -> (i32, i32) {
    %c0_i32 = arith.constant 0 : i32
    %c0_i32_0 = arith.constant 0 : i32
    %c0_i32_1 = arith.constant 0 : i32
    return %c0_i32, %c0_i32_0 : i32, i32
  }
  func.func @transform_6(%arg0: i32, %arg1: i32) -> (i32, i32, i32) {
    %c0_i32 = arith.constant 0 : i32
    %c0_i32_0 = arith.constant 0 : i32
    return %arg0, %arg1, %c0_i32 : i32, i32, i32
  }
  func.func @transform_7(%arg0: i32, %arg1: i32) -> (i32, i32, i32) {
    %c0_i32 = arith.constant 0 : i32
    %c0_i32_0 = arith.constant 0 : i32
    return %arg0, %arg1, %c0_i32 : i32, i32, i32
  }
  func.func @transform_8(%arg0: i32, %arg1: i32) -> (i32, i32, i32) {
    %c0_i32 = arith.constant 0 : i32
    %c0_i32_0 = arith.constant 0 : i32
    return %arg0, %arg1, %c0_i32 : i32, i32, i32
  }
}

</mosaic_0001>

<bundles_post_ra>
// kernel: tpu_custom_call.1
= control target key start
LH: loop header
LB: loop body
LE: loop exit
PB: predicated region body
PF: predicated region fallthrough
CT: control target
= control target key end

     0   :  { %s1681_s0 = inlined_call_operand.hbm [shape: f32[2,8,32], index: 0, kind: input, shape index: {}]   ;;  %s1682_s1 = inlined_call_operand.hbm [shape: f32[2,8,32], index: 1, kind: input, shape index: {}]   ;;  %s1683_s2 = inlined_call_operand.hbm [shape: f32[2,8,32], index: 2, kind: input, shape index: {}]   ;;  %s1684_s3 = inlined_call_operand.hbm [shape: f32[32,32], index: 3, kind: input, shape index: {}]   ;;  %s1685_s4 = inlined_call_operand.hbm [shape: f32[32,32], index: 4, kind: input, shape index: {}]   ;;  %s1686_s5 = inlined_call_operand.hbm [shape: f32[32,32], index: 5, kind: input, shape index: {}]   ;;  %s1687_s6 = inlined_call_operand.vmem [shape: s8[2,8,8], index: 6, kind: input, shape index: {}]   ;;  %s1688_s7 = inlined_call_operand.hbm [shape: f32[2,8,32], index: 7, kind: output, shape index: {0}]   ;;  %s1689_s8 = inlined_call_operand.hbm [shape: f32[2,8,8], index: 8, kind: output, shape index: {1}]  }
   0x1   :  { %1703 = sst [smem:[#allocation28_spill]] %s1682_s1 }
   0x2   :  { %1704 = sst [smem:[#allocation29_spill]] %s1684_s3 }
   0x3   :  { %1705 = sst [smem:[#allocation30_spill]] %s1685_s4 }
   0x4   :  { %1706 = sst [smem:[#allocation31_spill]] %s1686_s5 }
   0x5   :  { %1707 = sst [smem:[#allocation32_spill]] %s1688_s7 }
   0x6   :  { %1708 = sst [smem:[#allocation33_spill]] %s1689_s8 }
   0x7   :  { %14 = vsyncpa [#allocation3], 0 }
   0x8   :  { %16 = vsyncpa [#allocation3 + $0x1], 0 }
   0x9   :  { %17 = vsyncpa [#allocation6], 0 }
   0xa   :  { %19 = vsyncpa [#allocation6 + $0x1], 0 }
   0xb   :  { %20 = vsyncpa [#allocation9], 0 }
   0xc   :  { %21 = vsyncpa [#allocation12], 0 }
   0xd   :  { %22 = vsyncpa [#allocation4], 0 }
   0xe   :  { %24 = vsyncpa [#allocation4 + $0x1], 0 }
   0xf   :  { %25 = vsyncpa [#allocation15], 0 }
  0x10   :  { %27 = vsyncpa [#allocation15 + $0x1], 0  ;;  %s1423_s27 = smov 0   ;;  %s1425_s28 = smov 0  }
  0x11   :  { %s1427_s29 = smov 0   ;;  %s1429_s30 = smov 0  }
  0x12   :  { %s1431_s9 = smov 0   ;;  %s1433_s10 = smov 0  }
  0x13 LB: > { %1709 = sst [smem:[#allocation22_spill]] %s1350_s27  ;;  %s1454_s11 = sadd.s32 4294967295, %s1370_s10   ;;  %s1370_s10 = sphi %s1433_s10, %s33_s10   ;;  %s1366_s9 = sphi %s1431_s9, %s1738_s9   ;;  %s1362_s30 = sphi %s1429_s30, %s1737_s30   ;;  %s1358_s29 = sphi %s1427_s29, %s1741_s29   ;;  %s1354_s28 = sphi %s1425_s28, %s1740_s28   ;;  %s1350_s27 = sphi %s1423_s27, %s1739_s27  }
  0x14   : > { %1710 = sst [smem:[#allocation23_spill]] %s1366_s9  ;;  %p916_p0 = scmp.ge.s32.totalorder %s1370_s10, 1 }
  0x15   : > { %1711 = sst [smem:[#allocation24_spill]] %s1370_s10  ;;  %p68_p1 = scmp.eq.s32.totalorder %s1454_s11, 0 }
  0x16   : > { %p277_p2 = scmp.lt.s32.totalorder %s1370_s10, 3  ;;  %s1712_s3 = sld [smem:[#allocation29_spill]] }
  0x17   : > { %s1372_s16 = smov [#allocation8]   ;;  %p920_p6 = scmp.ge.s32.totalorder %s1370_s10, 2 }
  0x18   : > { %p1462_p3 = pnand %p916_p0, %p277_p2  ;;  %s290_s17 = sshll.u32 %s1372_s16, 4  ;;  %s291_s17 = int_to_ptr.vmem [resolvable:$true] %s290_s17 }
  0x19   : > { %s1690_s19 = smov 128   ;;  %s1692_s20 = smov 8  }
  0x1a   : > { %p971_p4 = pneg %p1462_p3  ;;  %s915_s21 = sadd.s32 4294967294, %s1370_s10  }
  0x1b   : > { %s45_s22 = sadd.s32 1, %s1366_s9  ;;  %s54_s23 = sadd.s32 1, %s1358_s29 }
  0x1c   : > { %s288_s14 = sshll.u32 %s1712_s3, 4  ;;  %p1470_p5 = pnand %p971_p4, %p68_p1  ;;  %s289_s14 = int_to_ptr.hbm [resolvable:$true] %s288_s14 }
  0x1d   : > { %p47_p7 = scmp.ge.s32.totalorder %s45_s22, 2  ;;  %p61_p8 = scmp.ne.s32.totalorder %s1358_s29, %s1354_s28 }
  0x1e   : > { %974 = dma.hbm_to_vmem [thread:$0]  (!%p1470_p5), %s289_s14, 512, %s291_s17, [#allocation9], %s1690_s19, %s1690_s19, %s1692_s20  }
  0x1f   : > { %p62_p9 = scmp.eq.s32.totalorder %s1370_s10, 0  ;;  %p67_p10 = scmp.ne.s32.totalorder %s1354_s28, %s1350_s27 }
  0x20   : > { %s1743_s22 = smov (%p47_p7, %s45_s22), 0  ;;  %p236_p13 = scmp.eq.s32.totalorder %s1454_s11, 1 }
  0x21   : > { %1715 = sst [smem:[#allocation25_spill]] %s1743_s22  ;;  %p1490_p11 = por %p62_p9, %p61_p8 }
  0x22   : > { %p1496_p12 = por %p68_p1, %p67_p10  ;;  %s49_s26 = ssub.s32 %s1366_s9, %s1743_s22 }
  0x23   : > { %p52_p0 = scmp.eq.s32.totalorder %s49_s26, 0  ;;  %p242_p2 = scmp.eq.s32.totalorder %s915_s21, 1 }
  0x24   : > { %p1503_p4 = por %p236_p13, %p61_p8  ;;  %p1001_p7 = scmp.lt.s32.totalorder %s1370_s10, 2 }
  0x25   : > { %s1509_s13 = scalar_select %p52_p0, %s1358_s29, %s54_s23  }
  0x26   : > { %p1511_p9 = por %p242_p2, %p67_p10  ;;  %s1695_s16 = sand.u32 1, %s1358_s29  }
  0x27   : > { %1719 = sst [smem:[#allocation26_spill]] %s1509_s13  ;;  %s1518_s17 = sshll.u32 %s1695_s16, 3 }
  0x28   : > { %s1720_s14 = scalar_select %p1511_p9, 1, 0 }
  0x29   : > { %s1521_s19 = sshll.u32 %s1366_s9, 3  ;;  %p1525_p8 = pnand %p1001_p7, %p1490_p11 }
  0x2a   : > { %1721 = sst [smem:[#allocation27_spill]] %s1720_s14  ;;  %s352_s23 = sand.u32 1, %s1370_s10  }
  0x2b   : > { %s1723_s1 = sld [smem:[#allocation28_spill]]  ;;  %s356_s13 = scalar_lea.vmem [#allocation5], %s1518_s17 }
  0x2c   : > { %s364_s16 = sshll.u32 %s356_s13, 4  ;;  %s1535_s24 = scalar_lea.sflag [#allocation6], %s352_s23  ;;  %s365_s16 = int_to_ptr.vmem [resolvable:$true] %s364_s16 }
  0x2d   : > { %s1724_s4 = sld [smem:[#allocation30_spill]]  ;;  %s1375_s20 = smov [#allocation10]  }
  0x2e   : > { %s1725_s5 = sld [smem:[#allocation31_spill]]  ;;  %s1726_s23 = smov 8  }
  0x2f   : > { %s1727_s27 = smov 128   ;;  %s1376_s9 = smov [#allocation11]  }
  0x30   : > { %s336_s13 = scalar_lea.vmem [#allocation2], %s1518_s17  ;;  %s375_s7 = scalar_lea.vmem [#allocation7], %s1518_s17 }
  0x31   : > { %s360_s3 = scalar_lea.hbm %s1723_s1, %s1521_s19  ;;  %s345_s26 = sshll.u32 %s336_s13, 4  ;;  %s346_s26 = int_to_ptr.vmem [resolvable:$true] %s345_s26 }
  0x32   : > { %s362_s22 = sshll.u32 %s360_s3, 4  ;;  %s304_s3 = sshll.u32 %s1375_s20, 4  ;;  %s363_s22 = int_to_ptr.hbm [resolvable:$true] %s362_s22  ;;  %s305_s3 = int_to_ptr.vmem [resolvable:$true] %s304_s3 }
  0x33   : > { %987 = dma.hbm_to_vmem [thread:$0]  (!%p1525_p8), %s363_s22, 128, %s365_s16, %s1535_s24  }
  0x34   : > { %s302_s10 = sshll.u32 %s1724_s4, 4  ;;  %s316_s1 = sshll.u32 %s1725_s5, 4  ;;  %s303_s10 = int_to_ptr.hbm [resolvable:$true] %s302_s10  ;;  %s317_s1 = int_to_ptr.hbm [resolvable:$true] %s316_s1 }
  0x35   : > { %977 = dma.hbm_to_vmem [thread:$0]  (!%p1470_p5), %s303_s10, 512, %s305_s3, [#allocation9], %s1727_s27, %s1727_s27, %s1726_s23  }
  0x36   : > { %s318_s22 = sshll.u32 %s1376_s9, 4  ;;  %s341_s20 = scalar_lea.hbm %s1681_s0, %s1521_s19  ;;  %s319_s22 = int_to_ptr.vmem [resolvable:$true] %s318_s22 }
  0x37   : > { %980 = dma.hbm_to_vmem [thread:$0]  (!%p1470_p5), %s317_s1, 512, %s319_s22, [#allocation12], %s1727_s27, %s1727_s27, %s1726_s23  }
  0x38   : > { %s343_s4 = sshll.u32 %s341_s20, 4  ;;  %s1728_s10 = sand.u32 1, %s1358_s29   ;;  %s344_s4 = int_to_ptr.hbm [resolvable:$true] %s343_s4 }
  0x39   : > { %s333_s3 = scalar_lea.sflag [#allocation3], %s1728_s10  ;;  %s379_s5 = scalar_lea.hbm %s1683_s2, %s1521_s19 }
  0x3a   : > { %984 = dma.hbm_to_vmem [thread:$0]  (!%p1525_p8), %s344_s4, 128, %s346_s26, %s333_s3  }
  0x3b   : > { %s383_s8 = sshll.u32 %s375_s7, 4  ;;  %s381_s1 = sshll.u32 %s379_s5, 4  ;;  %s384_s8 = int_to_ptr.vmem [resolvable:$true] %s383_s8  ;;  %s382_s1 = int_to_ptr.hbm [resolvable:$true] %s381_s1 }
  0x3c   : > { %990 = dma.hbm_to_vmem [thread:$0]  (!%p1525_p8), %s382_s1, 128, %s384_s8, %s1535_s24  }
  0x3d   : > { %402 = sbr.rel (%p1462_p3) target bundleno = 747 (0x2eb), region = 48  ;;  %s1576_s27 = sand.u32 (!%p1462_p3), 1, %s1354_s28  }
  0x3e   : > { %s1579_s4 = sshll.u32 (!%p1462_p3), %s1576_s27, 3  ;;  %s405_s19 = scalar_lea.sflag (!%p1462_p3), [#allocation3], %s1576_s27 }
  0x3f   : > { %s408_s17 = scalar_lea.vmem (!%p1462_p3), [#allocation2], %s1579_s4 }
  0x42   : > { %1325 = dma.done.wait (%p1496_p12), %s405_s19, 128  }
  0x43   : > { %1327 = vsyncadd (%p1496_p12), %s405_s19, 4294967168  ;;  %s414_s5 = sand.u32 1, %s1454_s11   ;;  %s418_s8 = scalar_lea.vmem [#allocation5], %s1579_s4 }
  0x44   : > { %s415_s7 = scalar_lea.sflag [#allocation6], %s414_s5 }
  0x45   : > { %1329 = dma.done.wait (%p1496_p12), %s415_s7, 256  }
  0x46   : > { %1331 = vsyncadd (%p1496_p12), %s415_s7, 4294967040  ;;  %s428_s15 = scalar_lea.vmem [#allocation7], %s1579_s4 }
  0x47   : > { %1333 = dma.done.wait (%p68_p1), [#allocation9], 1024  }
  0x48   : > { %1335 = vsyncadd (%p68_p1), [#allocation9], 4294966272 }
  0x49   : > { %1337 = dma.done.wait (%p68_p1), [#allocation12], 512  }
  0x4a   : > { %1339 = vsyncadd (%p68_p1), [#allocation12], 4294966784  ;;  %v569_v0 = vld [vmem:[#allocation8 + $0x18] sm:$0xff]  ;;  %v568_v1 = vld [vmem:[#allocation8 + $0x10] sm:$0xff]  ;;  %vm513_vm0 = vcmask 261120   ;;  %p499_p1 = scmp.lt.s32.totalorder %s1362_s30, 1 }
  0x4b   : > { %v512_v2 = vld [vmem:[#allocation10 + $0x18] sm:$0xff]  ;;  %585 = vmatpush.msra.mxu2 %v569_v0  ;;  %v511_v3 = vld [vmem:[#allocation10 + $0x10] sm:$0xff]  ;;  %v567_v4 = vld [vmem:[#allocation8 + $0x8] sm:$0xff]  ;;  %v1377_v13 = vmov 0   ;;  %vm625_vm3 = vcmask 64512   ;;  %s498_s22 = scalar_lea.vmem [#allocation14], %s1579_s4 }
  0x4c   : > { %529 = vmatpush.msra.mxu0 %v512_v2  ;;  %v510_v5 = vld [vmem:[#allocation10 + $0x8] sm:$0xff]  ;;  %v566_v6 = vld [vmem:[#allocation8] sm:$0xff]  ;;  %v565_v8 = vld [vmem:[%s408_s17] sm:$0xff]  ;;  %s500_s11 = scalar_select %p499_p1, %s1362_s30, 1 }
  0x4d   : > { %586 = vmatpush.msra.mxu2 %v568_v1  ;;  %v509_v7 = vld [vmem:[#allocation10] sm:$0xff]  ;;  %v541_v20 = vld [vmem:[#allocation11 + $0x18] sm:$0xff]  ;;  %v540_v21 = vld [vmem:[#allocation11 + $0x10] sm:$0xff]  ;;  %s945_s14 = sshll.u32 %s1362_s30, 3  ;;  %s1731_s13 = sld [smem:[#allocation33_spill]] }
  0x4e   : > { %530 = vmatpush.msra.mxu0 %v511_v3  ;;  %v508_v9 = vld [vmem:[%s418_s8] sm:$0xff]  ;;  %s936_s25 = sshll.u32 %s500_s11, 1  ;;  %557 = vmatpush.msra.mxu1 %v541_v20  ;;  %v537_v24 = vld [vmem:[%s428_s15] sm:$0xff]  ;;  %s710_s10 = sshll.u32 %s498_s22, 4  ;;  %s711_s10 = int_to_ptr.vmem [resolvable:$true] %s710_s10 }
  0x4f   : > { %587 = vmatpush.msra.mxu2 %v567_v4  ;;  %s505_s23 = scalar_lea.vmem %s1687_s6, %s936_s25  ;;  %v539_v22 = vld [vmem:[#allocation11 + $0x8] sm:$0xff]  ;;  %v538_v23 = vld [vmem:[#allocation11] sm:$0xff]  ;;  %s682_s18 = scalar_lea.sflag [#allocation15], %s1576_s27 }
  0x50   : > { %531 = vmatpush.msra.mxu0 %v510_v5  ;;  %v619_v12 = vld [vmem:[%s505_s23] sm:$0x3]  ;;  %558 = vmatpush.msra.mxu1 %v540_v21 }
  0x51   : > { %588 = vmatpush.msra.mxu2 %v566_v6  ;;  %vm620_vm1 = vnez %v619_v12 }
  0x52   : > { %532 = vmatpush.msra.mxu0 %v509_v7  ;;  %939 = vmatmul.msk.f32.vlgmr.msra.gmra.mxu2 %vm513_vm0, %v565_v8  ;;  %v621_v14 = vsel %vm620_vm1, 16843009, %v1377_v13 }
  0x53   : > { %937 = vmatmul.msk.f32.vlgmr.msra.gmra.mxu0 %vm513_vm0, %v508_v9  ;;  %v622_v15 = vunpack.c.0.s8 %v621_v14  ;;  %559 = vmatpush.msra.mxu1 %v539_v22  ;;  %s708_s26 = scalar_lea.hbm %s1731_s13, %s945_s14  ;;  %s1264_s30 = scalar_lea.hbm %s1731_s13, 16 }
  0x54   : > { %s712_s3 = sshll.u32 %s708_s26, 4  ;;  %s713_s3 = int_to_ptr.hbm [resolvable:$true] %s712_s3 }
  0x55   : > { %vm1611_vm2 = vcmp.ne.s32.totalorder %v622_v15, 0  ;;  %560 = vmatpush.msra.mxu1 %v538_v23  ;;  %s1258_s9 = sshra.s32 %s713_s3, 4  ;;  %s1259_s9 = int_to_ptr.hbm [resolvable:$true] %s1258_s9 }
  0x56   : > { %938 = vmatmul.msk.f32.vlgmr.msra.gmra.mxu1 %vm513_vm0, %v537_v24  ;;  %s1260_s1 = scalar_lea.hbm %s1259_s9, 8  ;;  %p1265_p11 = scmp.lt.s32.totalorder %s1259_s9, %s1731_s13 }
  0x57   : > { %p1261_p3 = scmp.ne.s32.totalorder %s1259_s9, %s1260_s1  ;;  %p1266_p12 = scmp.lt.s32.totalorder %s1264_s30, %s1260_s1 }
  0x59   : > { %p1262_p5 = pnand %p1261_p3, %p1503_p4  ;;  %p1267_p13 = por %p1266_p12, %p1265_p11 }
  0x5b   : > { %p1263_p10 = pneg %p1262_p5 }
  0x5d   : > { %p1268_p0 = pnand %p1267_p13, %p1263_p10 }
  0xd0   : > { %v534_v10 = vpop.f32.mrf.mxu0 }
  0xd1   : > { %940 = vmatpush.xpose.msk.msra.mxu3 %vm513_vm0, %v534_v10 }
  0xd3   : > { %v562_v30 = vpop.f32.mrf.mxu1 }
  0xd5   : > { %v590_v11 = vpop.f32.mrf.mxu2  ;;  %669 = vmatpush.msrb.mxu3 %v562_v30 }
  0xd6   : > { %941 = vmatmul.msk.f32.vlgmr.msra.gmra.mxu3 %vm513_vm0, %v590_v11 }
 0x159   : > { %v616_v17 = vpop.f32.mrf.mxu3 }
 0x15a   : > { %v624_v18 = vsel %vm1611_vm2, -inf, %v616_v17 }
 0x15b   : > { %v626_v19 = vsel %vm625_vm3, %v624_v18, -inf }
 0x15c   : > { %627 = vmax.xlane.f32.xlu0 %v626_v19 }
 0x1cf   : > { %v628_v25 = vpop.xlane.xlu0 %627 }
 0x1d0   : > { %v629_v26 = vsub.f32 %v624_v18, %v628_v25 }
 0x1d2   : > { %v630_v27 = vmul.f32 1.442695, %v629_v26 }
 0x1d4   : > { %1060 = vpow2.f32 %v630_v27 }
 0x1da   : > { %v1061_v28 = vpop.eup %1060 }
 0x1db   : > { %v632_v29 = vsel %vm625_vm3, %v1061_v28, 0.0 }
 0x1dc   : > { %633 = vadd.xlane.f32.xlu0 %v632_v29 }
 0x24f   : > { %v634_v31 = vpop.xlane.xlu0 %633 }
 0x250   : > { %1062 = vrcp.f32 %v634_v31  ;;  %v646_v35 = vand.u32 2147483648, %v634_v31  ;;  %v644_v37 = vand.u32 2147483647, %v634_v31  ;;  %vm640_vm5 = vweird.f32 %v634_v31 }
 0x252   : > { %v647_v39 = vor.u32 1.1754944e-38, %v646_v35  ;;  %vm645_vm7 = vcmp.eq.f32.partialorder %v644_v37, 8.507059e+37 }
 0x256   : > { %v1063_v32 = vpop.eup %1062 }
 0x257   : > { %v636_v33 = vmul.f32 %v1063_v32, %v634_v31  ;;  %vm641_vm4 = vweird.f32 %v1063_v32 }
 0x258   : > { %vm642_vm6 = vmor %vm640_vm5, %vm641_vm4 }
 0x259   : > { %v637_v34 = vsub.f32 1.0, %v636_v33 }
 0x25b   : > { %v638_v36 = vmul.f32 %v1063_v32, %v637_v34 }
 0x25d   : > { %v639_v38 = vadd.f32 %v1063_v32, %v638_v36 }
 0x25f   : > { %v643_v40 = vsel %vm642_vm6, %v1063_v32, %v639_v38 }
 0x260   : > { %v648_v41 = vsel %vm645_vm7, %v647_v39, %v643_v40 }
 0x261   : > { %v649_v42 = vmul.f32 %v1061_v28, %v648_v41 }
 0x263   : > { %v650_v43 = vsel %vm1611_vm2, 0.0, %v649_v42 }
 0x264   : > { %942 = vmatmul.msk.f32.vlgmr.msrb.gmra.mxu3 %vm625_vm3, %v650_v43  ;;  %675 = vst.msk [vmem:[%s498_s22] sm:$0xff] %vm625_vm3, %v650_v43 }
 0x265   : > { %1271 = shalt.err (!%p1268_p0)
}
 0x266   : > { %968 = dma.vmem_to_hbm [thread:$0]  (%p1503_p4), %s711_s10, 128, %s713_s3, %s682_s18  }
 0x267   : > { %s1732_s11 = sld [smem:[#allocation32_spill]]  ;;  %s491_s21 = scalar_lea.vmem [#allocation13], %s1579_s4 }
 0x268   : > { %s695_s24 = sshll.u32 %s491_s21, 4  ;;  %s677_s22 = scalar_lea.sflag [#allocation4], %s1576_s27  ;;  %s696_s24 = int_to_ptr.vmem [resolvable:$true] %s695_s24 }
 0x26d   : > { %s693_s25 = scalar_lea.hbm %s1732_s11, %s945_s14  ;;  %s1292_s14 = scalar_lea.hbm %s1732_s11, 16 }
 0x26e   : > { %s697_s23 = sshll.u32 %s693_s25, 4  ;;  %s698_s23 = int_to_ptr.hbm [resolvable:$true] %s697_s23 }
 0x26f   : > { %s1286_s16 = sshra.s32 %s698_s23, 4  ;;  %s1287_s16 = int_to_ptr.hbm [resolvable:$true] %s1286_s16 }
 0x270   : > { %s1288_s20 = scalar_lea.hbm %s1287_s16, 8  ;;  %p1293_p1 = scmp.lt.s32.totalorder %s1287_s16, %s1732_s11 }
 0x271   : > { %p1289_p2 = scmp.ne.s32.totalorder %s1287_s16, %s1288_s20  ;;  %p1294_p3 = scmp.lt.s32.totalorder %s1292_s14, %s1288_s20 }
 0x273   : > { %p1290_p7 = pnand %p1289_p2, %p1503_p4  ;;  %p1295_p5 = por %p1294_p3, %p1293_p1 }
 0x275   : > { %p1291_p8 = pneg %p1290_p7 }
 0x277   : > { %p1296_p10 = pnand %p1295_p5, %p1291_p8 }
 0x2e7   : > { %v671_v44 = vpop.f32.mrf.mxu3 }
 0x2e8   : > { %674 = vst.msk [vmem:[%s491_s21] sm:$0xff] %vm513_vm0, %v671_v44 }
 0x2e9   : > { %1299 = shalt.err (!%p1296_p10)
}
 0x2ea   : > { %967 = dma.vmem_to_hbm [thread:$0]  (%p1503_p4), %s696_s24, 128, %s698_s23, %s677_s22  }
 0x2eb PF: > { %s1733_s27 = sld [smem:[#allocation22_spill]]  ;;  %p992_p11 = pnand %p920_p6, %p1511_p9 }
 0x2ec   : > { %s1735_s9 = sld [smem:[#allocation24_spill]] }
 0x2ed   : > { %p993_p12 = pneg %p992_p11 }
 0x2f1   : > { %s724_s1 = sand.u32 1, %s1733_s27  }
 0x2f2   : > { %s725_s19 = scalar_lea.sflag [#allocation4], %s724_s1 }
 0x2f3   : > { %1341 = dma.done.wait (%p993_p12), %s725_s19, 128  }
 0x2f4   : > { %1343 = vsyncadd (%p993_p12), %s725_s19, 4294967168  ;;  %s735_s17 = scalar_lea.sflag [#allocation15], %s724_s1 }
 0x2f5   : > { %1345 = dma.done.wait (%p993_p12), %s735_s17, 128  }
 0x2f6   : > { %1347 = vsyncadd (%p993_p12), %s735_s17, 4294967168  ;;  %s33_s10 = sadd.s32 1, %s1735_s9   ;;  %s1736_s12 = sld [smem:[#allocation26_spill]] }
 0x2f7   : > { %p30_p13 = scmp.ge.s32.totalorder %s33_s10, 4   ;;  %s1737_s30 = sld [smem:[#allocation23_spill]] }
 0x2f8   : > { %s1738_s9 = sld [smem:[#allocation25_spill]]  ;;  %s1739_s27 = smov %s1354_s28 }
 0x2f9   : > { %s1740_s28 = smov %s1358_s29  ;;  %32 = sbr.rel (!%p30_p13) target bundleno = 19 (0x13), region = 149 }
 0x2fc   : > { %s1741_s29 = smov %s1736_s12 }
 0x2fe   :  { %741 = vsyncpa [#allocation3], 1 }
 0x2ff   :  { %743 = vsyncpa [#allocation3 + $0x1], 1 }
 0x300   :  { %744 = vsyncpa [#allocation6], 1 }
 0x301   :  { %746 = vsyncpa [#allocation6 + $0x1], 1 }
 0x302   :  { %747 = vsyncpa [#allocation9], 1 }
 0x303   :  { %748 = vsyncpa [#allocation12], 1 }
 0x304   :  { %749 = vsyncpa [#allocation4], 1 }
 0x305   :  { %751 = vsyncpa [#allocation4 + $0x1], 1 }
 0x306   :  { %752 = vsyncpa [#allocation15], 1 }
 0x307   :  { %754 = vsyncpa [#allocation15 + $0x1], 1 }

</bundles_post_ra>
